<compile_context>
chip_gen: v7x
topology: tpu7x:2x2x1
jax: 0.10.0
libtpu: 0.0.40
codegen_flags: <defaults>
</compile_context>

<pallas_src>
import functools

import jax
import jax.numpy as jnp
from jax import lax
from jax.experimental import pallas as pl
from jax.experimental.pallas import tpu as pltpu


def _round_up(n, m):
    return ((n + m - 1) // m) * m


# ---------------------------------------------------------------------------
# Fused projection + flash-style causal attention kernel.
# Grid: (B, n_pairs) where n_pairs enumerates lower-triangular (qi, ki) tiles.
# ---------------------------------------------------------------------------
def _fused_head_kernel(qi_tbl, ki_tbl, xq_ref, xk_ref, wq_ref, wk_ref, wv_ref,
                       o_ref, q_sc, m_sc, l_sc, acc_sc, *, tq, tk):
    p = pl.program_id(1)
    qi = qi_tbl[p]
    ki = ki_tbl[p]

    @pl.when(ki == 0)
    def _():
        m_sc[...] = jnp.full_like(m_sc, -jnp.inf)
        l_sc[...] = jnp.zeros_like(l_sc)
        acc_sc[...] = jnp.zeros_like(acc_sc)
        # Project q once per (b, qi); wq already carries the 1/sqrt(H) scale.
        q_sc[...] = jnp.dot(
            xq_ref[...], wq_ref[...],
            preferred_element_type=jnp.float32).astype(q_sc.dtype)

    # Project k, v for this key tile on the fly (no qkv HBM round trip).
    xk = xk_ref[...]                                             # (tk, C) bf16
    k = jnp.dot(xk, wk_ref[...],
                preferred_element_type=jnp.float32).astype(jnp.bfloat16)
    v = jnp.dot(xk, wv_ref[...],
                preferred_element_type=jnp.float32).astype(jnp.bfloat16)

    # Scores: contraction over the head dim (no explicit k.T / XLU transpose).
    s = jnp.einsum("qd,kd->qk", q_sc[...], k,
                   preferred_element_type=jnp.float32)           # (tq, tk) f32

    def online_softmax_update(scores):
        m_prev = m_sc[...]
        m_new = jnp.maximum(m_prev, scores.max(axis=-1, keepdims=True))
        alpha = jnp.exp(m_prev - m_new)
        pmat = jnp.exp(scores - m_new)
        l_sc[...] = alpha * l_sc[...] + pmat.sum(axis=-1, keepdims=True)
        acc_sc[...] = alpha * acc_sc[...] + jnp.dot(
            pmat.astype(jnp.bfloat16), v, preferred_element_type=jnp.float32)
        m_sc[...] = m_new

    # Diagonal tile: tile-local causal mask (tq == tk so no global offsets),
    # then finalize — this is always the last key tile for this q row.
    @pl.when(ki == qi)
    def _():
        row = lax.broadcasted_iota(jnp.int32, (tq, tk), 0)
        col = lax.broadcasted_iota(jnp.int32, (tq, tk), 1)
        online_softmax_update(jnp.where(col <= row, s, jnp.float32(-1e30)))
        inv_l = pl.reciprocal(l_sc[...], approx=True)            # EUP slot
        o_ref[...] = (acc_sc[...] * inv_l).astype(o_ref.dtype)

    # Strictly-below-diagonal tile: fully visible, no mask work at all.
    @pl.when(ki < qi)
    def _():
        online_softmax_update(s)


# ---------------------------------------------------------------------------
# Wrapper
# ---------------------------------------------------------------------------
def single_head_forward(x, wq, wk, wv):
    """Single causal self-attention head (SingleHead.forward, eval mode).

    x: (B, T, C) float32; wq/wk/wv: (C, H) float32.  Returns (B, T, H) float32.
    """
    B, T, C = x.shape
    H = wq.shape[1]

    # ---- tiling ----------------------------------------------------------
    if T <= 256:
        tile = _round_up(T, 8)          # single (sublane-aligned) q/k tile
    elif T % 256 == 0:
        tile = 256                      # fills v6e/v7x's 256-wide MXU
    else:
        tile = 128
    Tp = _round_up(T, tile)
    n_q = Tp // tile

    # Lower-triangular (qi, ki) pair tables (scalar-prefetched into SMEM):
    # causally-skipped key tiles never become grid steps, so no wasted DMAs
    # and no wasted per-step overhead.
    pairs = [(qi, ki) for qi in range(n_q) for ki in range(qi + 1)]
    qi_tbl = jnp.asarray([pr[0] for pr in pairs], dtype=jnp.int32)
    ki_tbl = jnp.asarray([pr[1] for pr in pairs], dtype=jnp.int32)
    n_pairs = len(pairs)

    # ---- operands --------------------------------------------------------
    scale = float(H) ** -0.5
    x_b = x.astype(jnp.bfloat16)
    if Tp != T:
        # Zero rows are inert: padded keys sit above the diagonal of the last
        # tile (masked), padded query rows are sliced off below.
        x_b = jnp.pad(x_b, ((0, 0), (0, Tp - T), (0, 0)))
    wq_b = (wq * scale).astype(jnp.bfloat16)   # fold 1/sqrt(H) into q weights
    wk_b = wk.astype(jnp.bfloat16)
    wv_b = wv.astype(jnp.bfloat16)

    kernel = functools.partial(_fused_head_kernel, tq=tile, tk=tile)

    out = pl.pallas_call(
        kernel,
        out_shape=jax.ShapeDtypeStruct((B, Tp, H), x.dtype),
        grid_spec=pltpu.PrefetchScalarGridSpec(
            num_scalar_prefetch=2,
            grid=(B, n_pairs),
            in_specs=[
                # x rows for the query tile (re-DMAed only when qi changes).
                pl.BlockSpec((None, tile, C),
                             lambda b, p, qt, kt: (b, qt[p], 0)),
                # x rows for the key tile.
                pl.BlockSpec((None, tile, C),
                             lambda b, p, qt, kt: (b, kt[p], 0)),
                # Tiny (C, H) weights: VMEM-resident for the whole call.
                pl.BlockSpec((C, H), lambda b, p, qt, kt: (0, 0)),
                pl.BlockSpec((C, H), lambda b, p, qt, kt: (0, 0)),
                pl.BlockSpec((C, H), lambda b, p, qt, kt: (0, 0)),
            ],
            out_specs=pl.BlockSpec((None, tile, H),
                                   lambda b, p, qt, kt: (b, qt[p], 0)),
            scratch_shapes=[
                pltpu.VMEM((tile, H), jnp.bfloat16),   # projected q tile
                pltpu.VMEM((tile, 1), jnp.float32),    # running max m
                pltpu.VMEM((tile, 1), jnp.float32),    # running sum l
                pltpu.VMEM((tile, H), jnp.float32),    # output accumulator
            ],
        ),
        compiler_params=pltpu.CompilerParams(
            dimension_semantics=("parallel", "arbitrary"),
            vmem_limit_bytes=48 << 20,   # < v7x's 64 MiB physical VMEM
        ),
    )(qi_tbl, ki_tbl, x_b, x_b, wq_b, wk_b, wv_b)

    return out[:, :T, :]


if __name__ == "__main__":
    # Hyperparameters implied by SingleHead(hidden_dim, n_embed, block_size, ...)
    n_embed = 32      # C
    hidden_dim = 16   # H
    block_size = 8    # T
    batch = 2

    key = jax.random.PRNGKey(0)
    kx, kq, kk, kv = jax.random.split(key, 4)

    x = jax.random.normal(kx, (batch, block_size, n_embed), dtype=jnp.float32)
    w_scale = 1.0 / jnp.sqrt(jnp.float32(n_embed))
    wq = jax.random.uniform(kq, (n_embed, hidden_dim), jnp.float32, -w_scale, w_scale)
    wk = jax.random.uniform(kk, (n_embed, hidden_dim), jnp.float32, -w_scale, w_scale)
    wv = jax.random.uniform(kv, (n_embed, hidden_dim), jnp.float32, -w_scale, w_scale)

    out = single_head_forward(x, wq, wk, wv)
    out = jax.block_until_ready(out)

    # Pure-JAX f32 reference (kernel uses bf16 MXU operands -> relaxed tolerance).
    q = x @ wq
    k = x @ wk
    v = x @ wv
    s = jnp.einsum("btd,bsd->bts", q, k) * (float(hidden_dim) ** -0.5)
    mask = jnp.tril(jnp.ones((block_size, block_size), bool))
    s = jnp.where(mask[None], s, -jnp.inf)
    p = jax.nn.softmax(s, axis=-1)
    ref = jnp.einsum("bts,bsd->btd", p, v)

    assert out.shape == (batch, block_size, hidden_dim)
    assert jnp.allclose(out, ref, atol=3e-2, rtol=3e-2), float(jnp.max(jnp.abs(out - ref)))

    print("KERNEL_OK")
</pallas_src>

<mosaic_0001>
module attributes {stable_mosaic.version = 11 : i64} {
  func.func @_fused_head_kernel(%arg0: i32, %arg1: i32, %arg2: memref<1xi32, #tpu.memory_space<smem>>, %arg3: memref<1xi32, #tpu.memory_space<smem>>, %arg4: memref<1x8x32xbf16, #tpu.memory_space<vmem>>, %arg5: memref<1x8x32xbf16, #tpu.memory_space<vmem>>, %arg6: memref<32x16xbf16, #tpu.memory_space<vmem>>, %arg7: memref<32x16xbf16, #tpu.memory_space<vmem>>, %arg8: memref<32x16xbf16, #tpu.memory_space<vmem>>, %arg9: memref<1x8x16xf32, #tpu.memory_space<vmem>>, %arg10: memref<8x16xbf16, #tpu.memory_space<vmem>>, %arg11: memref<8x1xf32, #tpu.memory_space<vmem>>, %arg12: memref<8x1xf32, #tpu.memory_space<vmem>>, %arg13: memref<8x16xf32, #tpu.memory_space<vmem>>) attributes {dimension_semantics = [#tpu.dimension_semantics<parallel>, #tpu.dimension_semantics<arbitrary>], iteration_bounds = array<i64: 2, 1>, scalar_prefetch = 2 : i64, scratch_operands = 4 : i64, tpu.core_type = #tpu.core_type<tc>, window_params = [{transform_indices = @transform_0, window_bounds = array<i64: 1, 8, 32>}, {transform_indices = @transform_1, window_bounds = array<i64: 1, 8, 32>}, {pipeline_mode = #tpu.pipeline_mode<synchronous>, transform_indices = @transform_2, window_bounds = array<i64: 32, 16>}, {pipeline_mode = #tpu.pipeline_mode<synchronous>, transform_indices = @transform_3, window_bounds = array<i64: 32, 16>}, {pipeline_mode = #tpu.pipeline_mode<synchronous>, transform_indices = @transform_4, window_bounds = array<i64: 32, 16>}, {transform_indices = @transform_5, window_bounds = array<i64: 1, 8, 16>}]} {
    %0 = arith.index_cast %arg1 : i32 to index
    %1 = memref.load %arg2[%0] : memref<1xi32, #tpu.memory_space<smem>>
    %2 = arith.index_cast %arg1 : i32 to index
    %3 = memref.load %arg3[%2] : memref<1xi32, #tpu.memory_space<smem>>
    %c0_i32 = arith.constant 0 : i32
    %4 = arith.cmpi eq, %3, %c0_i32 : i32
    %5 = arith.extui %4 : i1 to i32
    %c0_i32_0 = arith.constant 0 : i32
    %6 = arith.cmpi ne, %5, %c0_i32_0 : i32
    scf.if %6 {
      %cst_13 = arith.constant 0xFF800000 : f32
      %23 = vector.broadcast %cst_13 : f32 to vector<8x1xf32>
      %c0_14 = arith.constant 0 : index
      %c0_15 = arith.constant 0 : index
      %24 = vector.load %arg11[%c0_14, %c0_15] : memref<8x1xf32, #tpu.memory_space<vmem>>, vector<8x1xf32>
      tpu.vector_store %arg11[%c0_14, %c0_15], %23 {strides = array<i32>} : memref<8x1xf32, #tpu.memory_space<vmem>>, vector<8x1xf32>,
      %cst_16 = arith.constant 0.000000e+00 : f32
      %25 = vector.broadcast %cst_16 : f32 to vector<8x1xf32>
      %c0_17 = arith.constant 0 : index
      %c0_18 = arith.constant 0 : index
      %26 = vector.load %arg12[%c0_17, %c0_18] : memref<8x1xf32, #tpu.memory_space<vmem>>, vector<8x1xf32>
      tpu.vector_store %arg12[%c0_17, %c0_18], %25 {strides = array<i32>} : memref<8x1xf32, #tpu.memory_space<vmem>>, vector<8x1xf32>,
      %cst_19 = arith.constant 0.000000e+00 : f32
      %27 = vector.broadcast %cst_19 : f32 to vector<8x16xf32>
      %c0_20 = arith.constant 0 : index
      %c0_21 = arith.constant 0 : index
      %28 = vector.load %arg13[%c0_20, %c0_21] : memref<8x16xf32, #tpu.memory_space<vmem>>, vector<8x16xf32>
      tpu.vector_store %arg13[%c0_20, %c0_21], %27 {strides = array<i32>} : memref<8x16xf32, #tpu.memory_space<vmem>>, vector<8x16xf32>,
      %c0_22 = arith.constant 0 : index
      %c0_23 = arith.constant 0 : index
      %c0_24 = arith.constant 0 : index
      %29 = vector.load %arg4[%c0_22, %c0_23, %c0_24] : memref<1x8x32xbf16, #tpu.memory_space<vmem>>, vector<1x8x32xbf16>
      %30 = vector.shape_cast %29 : vector<1x8x32xbf16> to vector<8x32xbf16>
      %c0_25 = arith.constant 0 : index
      %c0_26 = arith.constant 0 : index
      %31 = vector.load %arg6[%c0_25, %c0_26] : memref<32x16xbf16, #tpu.memory_space<vmem>>, vector<32x16xbf16>
      %cst_27 = arith.constant dense<0.000000e+00> : vector<8x16xf32>
      %32 = tpu.matmul %30, %31, %cst_27 {dimension_numbers = #tpu.dot_dimension_numbers<[1], [0], [0], [1], [0, 0, 1, 1], [], []>} : vector<8x32xbf16>, vector<32x16xbf16>, vector<8x16xf32> -> vector<8x16xf32>
      %33 = arith.truncf %32 : vector<8x16xf32> to vector<8x16xbf16>
      %c0_28 = arith.constant 0 : index
      %c0_29 = arith.constant 0 : index
      %34 = vector.load %arg10[%c0_28, %c0_29] : memref<8x16xbf16, #tpu.memory_space<vmem>>, vector<8x16xbf16>
      tpu.vector_store %arg10[%c0_28, %c0_29], %33 {strides = array<i32>} : memref<8x16xbf16, #tpu.memory_space<vmem>>, vector<8x16xbf16>,
    } else {
    }
    %c0 = arith.constant 0 : index
    %c0_1 = arith.constant 0 : index
    %c0_2 = arith.constant 0 : index
    %7 = vector.load %arg5[%c0, %c0_1, %c0_2] : memref<1x8x32xbf16, #tpu.memory_space<vmem>>, vector<1x8x32xbf16>
    %8 = vector.shape_cast %7 : vector<1x8x32xbf16> to vector<8x32xbf16>
    %c0_3 = arith.constant 0 : index
    %c0_4 = arith.constant 0 : index
    %9 = vector.load %arg7[%c0_3, %c0_4] : memref<32x16xbf16, #tpu.memory_space<vmem>>, vector<32x16xbf16>
    %cst = arith.constant dense<0.000000e+00> : vector<8x16xf32>
    %10 = tpu.matmul %8, %9, %cst {dimension_numbers = #tpu.dot_dimension_numbers<[1], [0], [0], [1], [0, 0, 1, 1], [], []>} : vector<8x32xbf16>, vector<32x16xbf16>, vector<8x16xf32> -> vector<8x16xf32>
    %11 = arith.truncf %10 : vector<8x16xf32> to vector<8x16xbf16>
    %c0_5 = arith.constant 0 : index
    %c0_6 = arith.constant 0 : index
    %12 = vector.load %arg8[%c0_5, %c0_6] : memref<32x16xbf16, #tpu.memory_space<vmem>>, vector<32x16xbf16>
    %cst_7 = arith.constant dense<0.000000e+00> : vector<8x16xf32>
    %13 = tpu.matmul %8, %12, %cst_7 {dimension_numbers = #tpu.dot_dimension_numbers<[1], [0], [0], [1], [0, 0, 1, 1], [], []>} : vector<8x32xbf16>, vector<32x16xbf16>, vector<8x16xf32> -> vector<8x16xf32>
    %14 = arith.truncf %13 : vector<8x16xf32> to vector<8x16xbf16>
    %c0_8 = arith.constant 0 : index
    %c0_9 = arith.constant 0 : index
    %15 = vector.load %arg10[%c0_8, %c0_9] : memref<8x16xbf16, #tpu.memory_space<vmem>>, vector<8x16xbf16>
    "tpu.trace_start"() <{level = 10 : i32, message = "qd,kd->qk"}> : () -> ()
    %cst_10 = arith.constant dense<0.000000e+00> : vector<8x8xf32>
    %16 = tpu.matmul %15, %11, %cst_10 {dimension_numbers = #tpu.dot_dimension_numbers<[1], [1], [0], [0], [0, 0, 1, 0], [], []>} : vector<8x16xbf16>, vector<8x16xbf16>, vector<8x8xf32> -> vector<8x8xf32>
    "tpu.trace_stop"() : () -> ()
    %17 = arith.cmpi eq, %3, %1 : i32
    %18 = arith.extui %17 : i1 to i32
    %c0_i32_11 = arith.constant 0 : i32
    %19 = arith.cmpi ne, %18, %c0_i32_11 : i32
    scf.if %19 {
      %23 = tpu.iota {dimensions = array<i32: 0>} : vector<8x8xi32>
      %24 = tpu.iota {dimensions = array<i32: 1>} : vector<8x8xi32>
      %25 = arith.cmpi sle, %24, %23 : vector<8x8xi32>
      %cst_13 = arith.constant -1.000000e+30 : f32
      %26 = vector.broadcast %cst_13 : f32 to vector<8x8xf32>
      %27 = arith.select %25, %16, %26 : vector<8x8xi1>, vector<8x8xf32>
      %c0_14 = arith.constant 0 : index
      %c0_15 = arith.constant 0 : index
      %28 = vector.load %arg11[%c0_14, %c0_15] : memref<8x1xf32, #tpu.memory_space<vmem>>, vector<8x1xf32>
      %cst_16 = arith.constant dense<0xFF800000> : vector<8xf32>
      %29 = vector.multi_reduction <maximumf>, %27, %cst_16 [1] : vector<8x8xf32> to vector<8xf32>
      %30 = vector.shape_cast %29 : vector<8xf32> to vector<8x1xf32>
      %31 = arith.maximumf %28, %30 : vector<8x1xf32>
      %32 = arith.subf %28, %31 : vector<8x1xf32>
      %33 = math.exp %32 : vector<8x1xf32>
      %34 = vector.broadcast %31 : vector<8x1xf32> to vector<8x8xf32>
      %35 = arith.subf %27, %34 : vector<8x8xf32>
      %36 = math.exp %35 : vector<8x8xf32>
      %c0_17 = arith.constant 0 : index
      %c0_18 = arith.constant 0 : index
      %37 = vector.load %arg12[%c0_17, %c0_18] : memref<8x1xf32, #tpu.memory_space<vmem>>, vector<8x1xf32>
      %38 = arith.mulf %33, %37 : vector<8x1xf32>
      %cst_19 = arith.constant dense<0.000000e+00> : vector<8xf32>
      %39 = vector.multi_reduction <add>, %36, %cst_19 [1] : vector<8x8xf32> to vector<8xf32>
      %40 = vector.shape_cast %39 : vector<8xf32> to vector<8x1xf32>
      %41 = arith.addf %38, %40 : vector<8x1xf32>
      %c0_20 = arith.constant 0 : index
      %c0_21 = arith.constant 0 : index
      %42 = vector.load %arg12[%c0_20, %c0_21] : memref<8x1xf32, #tpu.memory_space<vmem>>, vector<8x1xf32>
      tpu.vector_store %arg12[%c0_20, %c0_21], %41 {strides = array<i32>} : memref<8x1xf32, #tpu.memory_space<vmem>>, vector<8x1xf32>,
      %c0_22 = arith.constant 0 : index
      %c0_23 = arith.constant 0 : index
      %43 = vector.load %arg13[%c0_22, %c0_23] : memref<8x16xf32, #tpu.memory_space<vmem>>, vector<8x16xf32>
      %44 = vector.broadcast %33 : vector<8x1xf32> to vector<8x16xf32>
      %45 = arith.mulf %44, %43 : vector<8x16xf32>
      %46 = arith.truncf %36 : vector<8x8xf32> to vector<8x8xbf16>
      %cst_24 = arith.constant dense<0.000000e+00> : vector<8x16xf32>
      %47 = tpu.matmul %46, %14, %cst_24 {dimension_numbers = #tpu.dot_dimension_numbers<[1], [0], [0], [1], [0, 0, 1, 1], [], []>} : vector<8x8xbf16>, vector<8x16xbf16>, vector<8x16xf32> -> vector<8x16xf32>
      %48 = arith.addf %45, %47 : vector<8x16xf32>
      %c0_25 = arith.constant 0 : index
      %c0_26 = arith.constant 0 : index
      %49 = vector.load %arg13[%c0_25, %c0_26] : memref<8x16xf32, #tpu.memory_space<vmem>>, vector<8x16xf32>
      tpu.vector_store %arg13[%c0_25, %c0_26], %48 {strides = array<i32>} : memref<8x16xf32, #tpu.memory_space<vmem>>, vector<8x16xf32>,
      %c0_27 = arith.constant 0 : index
      %c0_28 = arith.constant 0 : index
      %50 = vector.load %arg11[%c0_27, %c0_28] : memref<8x1xf32, #tpu.memory_space<vmem>>, vector<8x1xf32>
      tpu.vector_store %arg11[%c0_27, %c0_28], %31 {strides = array<i32>} : memref<8x1xf32, #tpu.memory_space<vmem>>, vector<8x1xf32>,
      %c0_29 = arith.constant 0 : index
      %c0_30 = arith.constant 0 : index
      %51 = vector.load %arg12[%c0_29, %c0_30] : memref<8x1xf32, #tpu.memory_space<vmem>>, vector<8x1xf32>
      %52 = tpu.reciprocal %51 {approx = true} : vector<8x1xf32> -> vector<8x1xf32>
      %c0_31 = arith.constant 0 : index
      %c0_32 = arith.constant 0 : index
      %53 = vector.load %arg13[%c0_31, %c0_32] : memref<8x16xf32, #tpu.memory_space<vmem>>, vector<8x16xf32>
      %54 = vector.broadcast %52 : vector<8x1xf32> to vector<8x16xf32>
      %55 = arith.mulf %53, %54 : vector<8x16xf32>
      %c0_33 = arith.constant 0 : index
      %c0_34 = arith.constant 0 : index
      %c0_35 = arith.constant 0 : index
      %56 = vector.load %arg9[%c0_33, %c0_34, %c0_35] : memref<1x8x16xf32, #tpu.memory_space<vmem>>, vector<1x8x16xf32>
      %57 = vector.shape_cast %56 : vector<1x8x16xf32> to vector<8x16xf32>
      %58 = vector.shape_cast %55 : vector<8x16xf32> to vector<1x8x16xf32>
      tpu.vector_store %arg9[%c0_33, %c0_34, %c0_35], %58 {strides = array<i32>} : memref<1x8x16xf32, #tpu.memory_space<vmem>>, vector<1x8x16xf32>,
    } else {
    }
    %20 = arith.cmpi slt, %3, %1 : i32
    %21 = arith.extui %20 : i1 to i32
    %c0_i32_12 = arith.constant 0 : i32
    %22 = arith.cmpi ne, %21, %c0_i32_12 : i32
    scf.if %22 {
      %c0_13 = arith.constant 0 : index
      %c0_14 = arith.constant 0 : index
      %23 = vector.load %arg11[%c0_13, %c0_14] : memref<8x1xf32, #tpu.memory_space<vmem>>, vector<8x1xf32>
      %cst_15 = arith.constant dense<0xFF800000> : vector<8xf32>
      %24 = vector.multi_reduction <maximumf>, %16, %cst_15 [1] : vector<8x8xf32> to vector<8xf32>
      %25 = vector.shape_cast %24 : vector<8xf32> to vector<8x1xf32>
      %26 = arith.maximumf %23, %25 : vector<8x1xf32>
      %27 = arith.subf %23, %26 : vector<8x1xf32>
      %28 = math.exp %27 : vector<8x1xf32>
      %29 = vector.broadcast %26 : vector<8x1xf32> to vector<8x8xf32>
      %30 = arith.subf %16, %29 : vector<8x8xf32>
      %31 = math.exp %30 : vector<8x8xf32>
      %c0_16 = arith.constant 0 : index
      %c0_17 = arith.constant 0 : index
      %32 = vector.load %arg12[%c0_16, %c0_17] : memref<8x1xf32, #tpu.memory_space<vmem>>, vector<8x1xf32>
      %33 = arith.mulf %28, %32 : vector<8x1xf32>
      %cst_18 = arith.constant dense<0.000000e+00> : vector<8xf32>
      %34 = vector.multi_reduction <add>, %31, %cst_18 [1] : vector<8x8xf32> to vector<8xf32>
      %35 = vector.shape_cast %34 : vector<8xf32> to vector<8x1xf32>
      %36 = arith.addf %33, %35 : vector<8x1xf32>
      %c0_19 = arith.constant 0 : index
      %c0_20 = arith.constant 0 : index
      %37 = vector.load %arg12[%c0_19, %c0_20] : memref<8x1xf32, #tpu.memory_space<vmem>>, vector<8x1xf32>
      tpu.vector_store %arg12[%c0_19, %c0_20], %36 {strides = array<i32>} : memref<8x1xf32, #tpu.memory_space<vmem>>, vector<8x1xf32>,
      %c0_21 = arith.constant 0 : index
      %c0_22 = arith.constant 0 : index
      %38 = vector.load %arg13[%c0_21, %c0_22] : memref<8x16xf32, #tpu.memory_space<vmem>>, vector<8x16xf32>
      %39 = vector.broadcast %28 : vector<8x1xf32> to vector<8x16xf32>
      %40 = arith.mulf %39, %38 : vector<8x16xf32>
      %41 = arith.truncf %31 : vector<8x8xf32> to vector<8x8xbf16>
      %cst_23 = arith.constant dense<0.000000e+00> : vector<8x16xf32>
      %42 = tpu.matmul %41, %14, %cst_23 {dimension_numbers = #tpu.dot_dimension_numbers<[1], [0], [0], [1], [0, 0, 1, 1], [], []>} : vector<8x8xbf16>, vector<8x16xbf16>, vector<8x16xf32> -> vector<8x16xf32>
      %43 = arith.addf %40, %42 : vector<8x16xf32>
      %c0_24 = arith.constant 0 : index
      %c0_25 = arith.constant 0 : index
      %44 = vector.load %arg13[%c0_24, %c0_25] : memref<8x16xf32, #tpu.memory_space<vmem>>, vector<8x16xf32>
      tpu.vector_store %arg13[%c0_24, %c0_25], %43 {strides = array<i32>} : memref<8x16xf32, #tpu.memory_space<vmem>>, vector<8x16xf32>,
      %c0_26 = arith.constant 0 : index
      %c0_27 = arith.constant 0 : index
      %45 = vector.load %arg11[%c0_26, %c0_27] : memref<8x1xf32, #tpu.memory_space<vmem>>, vector<8x1xf32>
      tpu.vector_store %arg11[%c0_26, %c0_27], %26 {strides = array<i32>} : memref<8x1xf32, #tpu.memory_space<vmem>>, vector<8x1xf32>,
    } else {
    }
    return
  }
  func.func @transform_0(%arg0: i32, %arg1: i32, %arg2: memref<1xi32, #tpu.memory_space<smem>>, %arg3: memref<1xi32, #tpu.memory_space<smem>>) -> (i32, i32, i32) {
    %0 = arith.index_cast %arg1 : i32 to index
    %1 = memref.load %arg2[%0] : memref<1xi32, #tpu.memory_space<smem>>
    %c0_i32 = arith.constant 0 : i32
    %c0_i32_0 = arith.constant 0 : i32
    return %arg0, %1, %c0_i32 : i32, i32, i32
  }
  func.func @transform_1(%arg0: i32, %arg1: i32, %arg2: memref<1xi32, #tpu.memory_space<smem>>, %arg3: memref<1xi32, #tpu.memory_space<smem>>) -> (i32, i32, i32) {
    %0 = arith.index_cast %arg1 : i32 to index
    %1 = memref.load %arg3[%0] : memref<1xi32, #tpu.memory_space<smem>>
    %c0_i32 = arith.constant 0 : i32
    %c0_i32_0 = arith.constant 0 : i32
    return %arg0, %1, %c0_i32 : i32, i32, i32
  }
  func.func @transform_2(%arg0: i32, %arg1: i32, %arg2: memref<1xi32, #tpu.memory_space<smem>>, %arg3: memref<1xi32, #tpu.memory_space<smem>>) -> (i32, i32) {
    %c0_i32 = arith.constant 0 : i32
    %c0_i32_0 = arith.constant 0 : i32
    %c0_i32_1 = arith.constant 0 : i32
    return %c0_i32, %c0_i32_0 : i32, i32
  }
  func.func @transform_3(%arg0: i32, %arg1: i32, %arg2: memref<1xi32, #tpu.memory_space<smem>>, %arg3: memref<1xi32, #tpu.memory_space<smem>>) -> (i32, i32) {
    %c0_i32 = arith.constant 0 : i32
    %c0_i32_0 = arith.constant 0 : i32
    %c0_i32_1 = arith.constant 0 : i32
    return %c0_i32, %c0_i32_0 : i32, i32
  }
  func.func @transform_4(%arg0: i32, %arg1: i32, %arg2: memref<1xi32, #tpu.memory_space<smem>>, %arg3: memref<1xi32, #tpu.memory_space<smem>>) -> (i32, i32) {
    %c0_i32 = arith.constant 0 : i32
    %c0_i32_0 = arith.constant 0 : i32
    %c0_i32_1 = arith.constant 0 : i32
    return %c0_i32, %c0_i32_0 : i32, i32
  }
  func.func @transform_5(%arg0: i32, %arg1: i32, %arg2: memref<1xi32, #tpu.memory_space<smem>>, %arg3: memref<1xi32, #tpu.memory_space<smem>>) -> (i32, i32, i32) {
    %0 = arith.index_cast %arg1 : i32 to index
    %1 = memref.load %arg2[%0] : memref<1xi32, #tpu.memory_space<smem>>
    %c0_i32 = arith.constant 0 : i32
    %c0_i32_0 = arith.constant 0 : i32
    return %arg0, %1, %c0_i32 : i32, i32, i32
  }
}

</mosaic_0001>

<bundles_post_ra>
// kernel: tpu_custom_call.1
= control target key start
LH: loop header
LB: loop body
LE: loop exit
PB: predicated region body
PF: predicated region fallthrough
CT: control target
= control target key end

     0   :  { %s1319_s0 = inlined_call_operand.<no memory space> [shape: s32[1], index: 0, kind: input, shape index: {}]   ;;  %s1320_s1 = inlined_call_operand.<no memory space> [shape: s32[1], index: 1, kind: input, shape index: {}]   ;;  %s1321_s2 = inlined_call_operand.vmem [shape: bf16[2,8,32], index: 2, kind: input, shape index: {}]   ;;  %s1322_s3 = inlined_call_operand.vmem [shape: bf16[2,8,32], index: 3, kind: input, shape index: {}]   ;;  %s1323_s4 = inlined_call_operand.vmem [shape: bf16[32,16], index: 4, kind: input, shape index: {}]   ;;  %s1324_s5 = inlined_call_operand.vmem [shape: bf16[32,16], index: 5, kind: input, shape index: {}]   ;;  %s1325_s6 = inlined_call_operand.vmem [shape: bf16[32,16], index: 6, kind: input, shape index: {}]   ;;  %s1326_s7 = inlined_call_operand.hbm [shape: f32[2,8,16], index: 7, kind: output, shape index: {}]  }
   0x1   :  { %12 = sst [smem:[#allocation7]] %s1319_s0 }
   0x2   :  { %13 = sst [smem:[#allocation8]] %s1320_s1 }
   0x3   :  { %14 = vsyncpa [#allocation10], 0 }
   0x4   :  { %16 = vsyncpa [#allocation10 + $0x1], 0  ;;  %s1137_s28 = smov 0   ;;  %s1139_s29 = smov 0  }
   0x5   :  { %s1141_s30 = smov 0   ;;  %s1143_s8 = smov 0  }
   0x6   :  { %s1145_s9 = smov 0   ;;  %s1147_s10 = smov 0  }
   0x7 LB: > { %1330 = sst [smem:[#allocation12_spill]] %s1073_s9  ;;  %s829_s0 = sadd.s32 4294967295, %s1077_s10   ;;  %s1077_s10 = sphi %s1147_s10, %s22_s10   ;;  %s1073_s9 = sphi %s1145_s9, %s1336_s9   ;;  %s1069_s8 = sphi %s1143_s8, %s1335_s8   ;;  %s1065_s30 = sphi %s1141_s30, %s1339_s30   ;;  %s1061_s29 = sphi %s1139_s29, %s1338_s29   ;;  %s1057_s28 = sphi %s1137_s28, %s1337_s28  }
   0x8   : > { %s830_s1 = sadd.s32 4294967294, %s1077_s10   ;;  %s34_s11 = sadd.s32 1, %s1073_s9 }
   0x9   : > { %p36_p0 = scmp.ge.s32.totalorder %s34_s11, 2  ;;  %s168_s12 = sadd.s32 1, %s1065_s30 }
   0xa   : > { %p178_p1 = scmp.ne.s32.totalorder %s1065_s30, %s1061_s29  ;;  %p179_p2 = scmp.eq.s32.totalorder %s829_s0, 1 }
   0xb   : > { %s1341_s11 = smov (%p36_p0, %s34_s11), 0  ;;  %p184_p4 = scmp.ne.s32.totalorder %s1061_s29, %s1057_s28 }
   0xc   : > { %1331 = sst [smem:[#allocation13_spill]] %s1341_s11  ;;  %p1175_p3 = por %p179_p2, %p178_p1 }
   0xd   : > { %s163_s14 = ssub.s32 %s1073_s9, %s1341_s11  ;;  %p185_p5 = scmp.eq.s32.totalorder %s830_s1, 1 }
   0xe   : > { %p833_p6 = scmp.ge.s32.totalorder %s1077_s10, 1  ;;  %p166_p8 = scmp.eq.s32.totalorder %s163_s14, 0 }
   0xf   : > { %p1184_p7 = por %p185_p5, %p184_p4  ;;  %p236_p9 = scmp.lt.s32.totalorder %s1077_s10, 3 }
  0x10   : > { %s1190_s16 = scalar_select %p166_p8, %s1065_s30, %s168_s12  }
  0x11   : > { %p237_p10 = pnand %p833_p6, %p236_p9 }
  0x12   : > { %s1327_s17 = sand.u32 (!%p237_p10), 1, %s1061_s29   ;;  %s1193_s18 = sld [smem:[#allocation7]] (!%p237_p10) }
  0x13   : > { %240 = sbr.rel (%p237_p10) target bundleno = 1814 (0x716), region = 40  ;;  %s1197_s19 = sshll.u32 (!%p237_p10), %s1327_s17, 3 }
  0x14   : > { %p276_p11 = scmp.lt.s32.totalorder (!%p237_p10), %s1069_s8, 1  ;;  %s1200_s20 = sld [smem:[#allocation8]] (!%p237_p10) }
  0x15   : > { %s274_s9 = scalar_lea.vmem (!%p237_p10), [#allocation9], %s1197_s19 }
  0x18   : > { %p278_p12 = scmp.lt.s32.totalorder (!%p237_p10), %s1193_s18, 0 }
  0x1a   : > { %s277_s21 = scalar_select %p276_p11, %s1069_s8, 1 }
  0x1b   : > { %s279_s22 = scalar_select %p278_p12, %s1193_s18, 0 }
  0x1c   : > { %p287_p13 = scmp.lt.s32.totalorder %s1200_s20, 0  ;;  %p837_p0 = scmp.ne.s32.totalorder %s1200_s20, 0 }
  0x1d   : > { %s280_s23 = sadd.s32 %s279_s22, %s277_s21  ;;  %vm301_vm0 = vcmask (!%p837_p0), 7168   ;;  %vm304_vm1 = vcmask (!%p837_p0), 130048   ;;  %v1079_v0 = vmov (!%p837_p0), -inf   ;;  %v1080_v1 = vmov (!%p837_p0), 0.0   ;;  %v979_v2 = vld [vmem:[%s1323_s4] sm:$0xff] (!%p837_p0)   ;;  %v980_v3 = vld [vmem:[%s1323_s4 + $0x8] sm:$0xff] (!%p837_p0)  }
  0x1e   : > { %s835_s24 = sshll.u32 %s280_s23, 2  ;;  %300 = sbr.rel (%p837_p0) target bundleno = 253 (0xfd), region = 44  ;;  %302 = vst.msk [vmem:[#allocation3] sm:$0xff] (!%p837_p0), %vm301_vm0, %v1079_v0  ;;  %303 = vst.msk [vmem:[#allocation4] sm:$0xff] (!%p837_p0), %vm301_vm0, %v1080_v1  ;;  %871 = vmatprep.subr.bf16.mxu0 (!%p837_p0), %v1080_v1  ;;  %vm1081_vm2 = vmmov (!%p837_p0), 0   ;;  %vm323_vm3 = vcmask (!%p837_p0), 261120  }
  0x1f   : > { %s282_s27 = scalar_lea.vmem %s1321_s2, %s835_s24  ;;  %305 = vst.msk [vmem:[#allocation5] sm:$0xff] (!%p837_p0), %vm304_vm1, %v1080_v1  ;;  %875 = vmatprep.mubr.msk.bf16.mxu0 (!%p837_p0), %vm1081_vm2, %v1080_v1  ;;  %872 = vmatpush3.bf16.msra.mxu0 (!%p837_p0), %v979_v2  ;;  %vm368_vm4 = vcmask (!%p837_p0), 125952  }
  0x20   : > { %s288_s0 = scalar_select %p287_p13, %s1200_s20, 0 }
  0x21   : > { %873 = vmatprep.subr.bf16.mxu0 (!%p837_p0), %v1080_v1  ;;  %v306_v4 = vld [vmem:[%s282_s27] sm:$0xf] (!%p837_p0) }
  0x22   : > { %s289_s1 = sadd.s32 %s288_s0, %s277_s21 }
  0x23   : > { %s1210_s12 = sshll.u32 %s289_s1, 2  ;;  %874 = vmatpush3.bf16.msra.mxu0 (!%p837_p0), %v980_v3 }
  0x24   : > { %s291_s11 = scalar_lea.vmem %s1322_s3, %s1210_s12 }
  0x26   : > { %876 = vmatmul.mubr.msk.bf16.vlgmr.msra.gmra.mrb[0].mxu0 %vm323_vm3, %v306_v4 }
  0xf9   : > { %v361_v5 = vpop.f32.mrb[0].mxu0 }
  0xfa   : > { %v367_v6 = vpack.c.bf16 %v361_v5, %v361_v5  ;;  %v877_v7 = vpop.f32.mrb[1].mxu0 }
  0xfb   : > { %v364_v8 = vpop.f32.mrb[2].mxu0 }
  0xfc   : > { %369 = vst.msk [vmem:[#allocation2] sm:$0xf] %vm368_vm4, %v367_v6  ;;  %v878_v9 = vpop.f32.mrb[3].mxu0 }
  0xfd PF: > { %v981_v10 = vld [vmem:[%s1324_s5] sm:$0xff]   ;;  %v1082_v11 = vmov 0.0   ;;  %v982_v12 = vld [vmem:[%s1324_s5 + $0x8] sm:$0xff]   ;;  %vm1083_vm5 = vmmov 0   ;;  %vm387_vm6 = vcmask 261120   ;;  %vm490_vm7 = vcmask 130048   ;;  %p848_p1 = scmp.ne.s32.totalorder %s1200_s20, %s1193_s18 }
  0xfe   : > { %879 = vmatprep.subr.bf16.mxu0 %v1082_v11  ;;  %887 = vmatprep.subr.bf16.mxu1 %v1082_v11  ;;  %v370_v13 = vld [vmem:[%s291_s11] sm:$0xf]  ;;  %v984_v15 = vld [vmem:[%s1325_s6 + $0x8] sm:$0xff]   ;;  %v541_v32 = vlaneseq (!%p848_p1)  ;;  %vm548_vm8 = vcmask (!%p848_p1), 64512   ;;  %v1084_v37 = vmov (!%p848_p1), 0   ;;  %vm570_vm10 = vcmask (!%p848_p1), 7168  }
  0xff   : > { %880 = vmatpush3.bf16.msra.mxu0 %v981_v10  ;;  %883 = vmatprep.mubr.msk.bf16.mxu0 %vm1083_vm5, %v1082_v11  ;;  %v983_v14 = vld [vmem:[%s1325_s6] sm:$0xff]   ;;  %vm583_vm11 = vcmask (!%p848_p1), 1043456   ;;  %v1085_v42 = vmov (!%p848_p1), 0.0   ;;  %vm1086_vm12 = vmmov (!%p848_p1), 0   ;;  %v564_v52 = vld [vmem:[#allocation4] sm:$0xff] (!%p848_p1)  ;;  %v572_v58 = vld [vmem:[#allocation5] sm:$0xff] (!%p848_p1) }
 0x100   : > { %881 = vmatprep.subr.bf16.mxu0 %v1082_v11  ;;  %891 = vmatprep.mubr.msk.bf16.mxu1 %vm1083_vm5, %v1082_v11  ;;  %v542_v33 = vshrl.u32 (!%p848_p1), %v541_v32, 7  ;;  %v544_v34 = vand.u32 (!%p848_p1), 127, %v541_v32  ;;  %v547_v38 = vld [vmem:[#allocation3] sm:$0xff] (!%p848_p1) }
 0x101   : > { %888 = vmatpush3.bf16.msra.mxu1 %v983_v14  ;;  %985 = vset.pattern.permute.xlu0 (!%p848_p1), %v1084_v37 }
 0x102   : > { %889 = vmatprep.subr.bf16.mxu1 %v1082_v11  ;;  %vm545_vm9 = vcmp.le.s32.totalorder (!%p848_p1), %v544_v34, %v542_v33  ;;  %986 = vset.pattern.permute.xlu1 (!%p848_p1), %v1084_v37 }
 0x103   : > { %882 = vmatpush3.bf16.msra.mxu0 %v982_v12  ;;  %v489_v22 = vld [vmem:[#allocation2] sm:$0xf] }
 0x104   : > { %895 = vmatprep.subr.bf16.mxu0 %v1082_v11 }
 0x105   : > { %890 = vmatpush3.bf16.msra.mxu1 %v984_v15 }
 0x106   : > { %884 = vmatmul.mubr.msk.bf16.vlgmr.msra.gmra.mrb[0].mxu0 %vm387_vm6, %v370_v13 }
 0x107   : > { %897 = vmatprep.mubr.msk.bf16.mxu0 %vm1083_vm5, %v1082_v11 }
 0x108   : > { %892 = vmatmul.mubr.msk.bf16.vlgmr.msra.gmra.mrb[0].mxu1 %vm387_vm6, %v370_v13 }
 0x1d9   : > { %v425_v16 = vpop.f32.mrb[0].mxu0 }
 0x1da   : > { %v431_v17 = vpack.c.bf16 %v425_v16, %v425_v16  ;;  %v885_v18 = vpop.f32.mrb[1].mxu0 }
 0x1db   : > { %v428_v19 = vpop.f32.mrb[2].mxu0  ;;  %v482_v23 = vpop.f32.mrb[0].mxu1 }
 0x1dc   : > { %v495_v20 = vsel %vm490_vm7, %v431_v17, 0  ;;  %v886_v21 = vpop.f32.mrb[3].mxu0  ;;  %v1243_v24 = vpack.c.bf16 %v482_v23, %v482_v23  ;;  %v893_v25 = vpop.f32.mrb[1].mxu1 }
 0x1dd   : > { %896 = vmatpush3.bf16.xpose.msra.mxu0 %v495_v20  ;;  %v485_v26 = vpop.f32.mrb[2].mxu1 }
 0x1de   : > { %v894_v27 = vpop.f32.mrb[3].mxu1  ;;  %901 = vmatprep.subr.bf16.mxu0 (!%p848_p1), %v1085_v42  ;;  %v585_v43 = vsel (!%p848_p1), %vm583_vm11, %v1243_v24, 0 }
 0x1e4   : > { %898 = vmatmul.mubr.msk.bf16.vlgmr.msra.gmra.mrb[4].mxu0 %vm490_vm7, %v489_v22 }
 0x1e5   : > { %903 = vmatprep.mubr.msk.bf16.mxu0 (!%p848_p1), %vm1086_vm12, %v1085_v42  ;;  %902 = vmatpush3.bf16.msra.mxu0 (!%p848_p1), %v585_v43 }
 0x2b4   : > { %540 = sbr.rel (%p848_p1) target bundleno = 1280 (0x500), region = 48 }
 0x2b7   : > { %v1245_v28 = vpop.f32.mrb[4].mxu0 }
 0x2b8   : > { %v899_v29 = vpop.f32.mrb[5].mxu0  ;;  %v546_v35 = vsel (!%p848_p1), %vm545_vm9, %v1245_v28, -1e+30 }
 0x2b9   : > { %v534_v30 = vpop.f32.mrb[6].mxu0  ;;  %v549_v36 = vsel (!%p848_p1), %vm548_vm8, %v546_v35, -inf }
 0x2ba   : > { %v900_v31 = vpop.f32.mrb[7].mxu0  ;;  %550 = vmax.xlane.f32.xlu0 (!%p848_p1), %v549_v36 }
 0x347   : > { %v551_v39 = vpop.xlane.xlu0 %550 }
 0x348   : > { %v552_v40 = vmax.f32 %v547_v38, %v551_v39 }
 0x34a   : > { %v553_v41 = vsub.f32 %v547_v38, %v552_v40  ;;  %629 = vst.msk [vmem:[#allocation3] sm:$0xff] %vm570_vm10, %v552_v40  ;;  %558 = vperm.xlu0 %985, %v552_v40  }
 0x34c   : > { %v554_v50 = vmul.f32 1.442695, %v553_v41 }
 0x3c9   : > { %v559_v44 = vpop.permute.xlu0 %558 }
 0x3ca   : > { %v561_v45 = vsub.f32 %v546_v35, %v559_v44 }
 0x3cc   : > { %v562_v46 = vmul.f32 1.442695, %v561_v45 }
 0x3ce   : > { %987 = vpow2.f32 %v562_v46 }
 0x3cf   : > { %989 = vpow2.f32 %v554_v50 }
 0x3d8   : > { %v988_v47 = vpop.eup %987 }
 0x3d9   : > { %v566_v48 = vsel %vm548_vm8, %v988_v47, 0.0  ;;  %v579_v49 = vpack.c.bf16 %v988_v47, %v988_v47  ;;  %v990_v51 = vpop.eup %989 }
 0x3da   : > { %567 = vadd.xlane.f32.xlu1 %v566_v48  ;;  %v565_v53 = vmul.f32 %v990_v51, %v564_v52 }
 0x3db   : > { %904 = vmatmul.mubr.msk.bf16.vlgmr.msra.gmra.mrb[0].mxu0 %vm548_vm8, %v579_v49 }
 0x3eb   : > { %575 = vperm.xlu1 %986, %v990_v51  }
 0x467   : > { %v568_v54 = vpop.xlane.xlu1 %567 }
 0x468   : > { %v569_v55 = vadd.f32 %v568_v54, %v565_v53 }
 0x46a   : > { %571 = vst.msk [vmem:[#allocation4] sm:$0xff] %vm570_vm10, %v569_v55 }
 0x46b   : > { %v576_v59 = vpop.permute.xlu1 %575 }
 0x46c   : > { %v578_v60 = vmul.f32 %v576_v59, %v572_v58 }
 0x471   : > { %v630_v56 = vld [vmem:[#allocation4] sm:$0xff] }
 0x472   : > { %991 = vrcp.f32 %v630_v56 }
 0x47c   : > { %v992_v57 = vpop.eup %991 }
 0x47d   : > { %635 = vperm.xlu1 %986, %v992_v57  }
 0x4ae   : > { %v621_v61 = vpop.f32.mrb[0].mxu0 }
 0x4af   : > { %v627_v62 = vadd.f32 %v621_v61, %v578_v60  ;;  %v905_v63 = vpop.f32.mrb[1].mxu0 }
 0x4b0   : > { %v624_v0 = vpop.f32.mrb[2].mxu0 }
 0x4b1   : > { %628 = vst.msk [vmem:[#allocation5] sm:$0xff] %vm490_vm7, %v627_v62  ;;  %v906_v1 = vpop.f32.mrb[3].mxu0 }
 0x4b8   : > { %v632_v2 = vld [vmem:[#allocation5] sm:$0xff] }
 0x4fc   : > { %v636_v3 = vpop.permute.xlu1 %635 }
 0x4fd   : > { %v638_v4 = vmul.f32 %v636_v3, %v632_v2 }
 0x4ff   : > { %639 = vst.msk [vmem:[%s274_s9] sm:$0xff] %vm490_vm7, %v638_v4 }
 0x500 PF: > { %p850_p2 = scmp.ge.s32.totalorder %s1200_s20, %s1193_s18 }
 0x501   : > { %vm645_vm13 = vcmask (!%p850_p2), 64512   ;;  %v1087_v6 = vmov (!%p850_p2), 0   ;;  %v644_v7 = vld [vmem:[#allocation3] sm:$0xff] (!%p850_p2)  ;;  %vm667_vm14 = vcmask (!%p850_p2), 7168   ;;  %vm680_vm15 = vcmask (!%p850_p2), 1043456   ;;  %v661_v21 = vld [vmem:[#allocation4] sm:$0xff] (!%p850_p2) }
 0x502   : > { %643 = sbr.rel (%p850_p2) target bundleno = 1787 (0x6fb), region = 52  ;;  %v646_v5 = vsel (!%p850_p2), %vm645_vm13, %v1245_v28, -inf  ;;  %993 = vset.pattern.permute.xlu0 (!%p850_p2), %v1087_v6  ;;  %994 = vset.pattern.permute.xlu1 (!%p850_p2), %v1087_v6  ;;  %v1088_v11 = vmov (!%p850_p2), 0.0   ;;  %v682_v12 = vsel (!%p850_p2), %vm680_vm15, %v1243_v24, 0  ;;  %vm1089_vm0 = vmmov (!%p850_p2), 0   ;;  %v669_v25 = vld [vmem:[#allocation5] sm:$0xff] (!%p850_p2) }
 0x503   : > { %647 = vmax.xlane.f32.xlu0 (!%p850_p2), %v646_v5  ;;  %907 = vmatprep.subr.bf16.mxu0 (!%p850_p2), %v1088_v11 }
 0x504   : > { %909 = vmatprep.mubr.msk.bf16.mxu0 (!%p850_p2), %vm1089_vm0, %v1088_v11  ;;  %908 = vmatpush3.bf16.msra.mxu0 (!%p850_p2), %v682_v12 }
 0x590   : > { %v648_v8 = vpop.xlane.xlu0 %647 }
 0x591   : > { %v649_v9 = vmax.f32 %v644_v7, %v648_v8 }
 0x593   : > { %v650_v10 = vsub.f32 %v644_v7, %v649_v9  ;;  %726 = vst.msk [vmem:[#allocation3] sm:$0xff] %vm667_vm14, %v649_v9  ;;  %655 = vperm.xlu0 %993, %v649_v9  }
 0x595   : > { %v651_v19 = vmul.f32 1.442695, %v650_v10 }
 0x612   : > { %v656_v13 = vpop.permute.xlu0 %655 }
 0x613   : > { %v658_v14 = vsub.f32 %v1245_v28, %v656_v13 }
 0x615   : > { %v659_v15 = vmul.f32 1.442695, %v658_v14 }
 0x617   : > { %995 = vpow2.f32 %v659_v15 }
 0x618   : > { %997 = vpow2.f32 %v651_v19 }
 0x621   : > { %v996_v16 = vpop.eup %995 }
 0x622   : > { %v663_v17 = vsel %vm645_vm13, %v996_v16, 0.0  ;;  %v676_v18 = vpack.c.bf16 %v996_v16, %v996_v16  ;;  %v998_v20 = vpop.eup %997 }
 0x623   : > { %664 = vadd.xlane.f32.xlu1 %v663_v17  ;;  %v662_v22 = vmul.f32 %v998_v20, %v661_v21 }
 0x624   : > { %910 = vmatmul.mubr.msk.bf16.vlgmr.msra.gmra.mrb[0].mxu0 %vm645_vm13, %v676_v18 }
 0x634   : > { %672 = vperm.xlu1 %994, %v998_v20  }
 0x6b0   : > { %v665_v23 = vpop.xlane.xlu1 %664 }
 0x6b1   : > { %v666_v24 = vadd.f32 %v665_v23, %v662_v22 }
 0x6b3   : > { %668 = vst.msk [vmem:[#allocation4] sm:$0xff] %vm667_vm14, %v666_v24 }
 0x6b4   : > { %v673_v26 = vpop.permute.xlu1 %672 }
 0x6b5   : > { %v675_v27 = vmul.f32 %v673_v26, %v669_v25 }
 0x6f7   : > { %v718_v28 = vpop.f32.mrb[0].mxu0 }
 0x6f8   : > { %v724_v29 = vadd.f32 %v718_v28, %v675_v27  ;;  %v911_v30 = vpop.f32.mrb[1].mxu0 }
 0x6f9   : > { %v721_v31 = vpop.f32.mrb[2].mxu0 }
 0x6fa   : > { %725 = vst.msk [vmem:[#allocation5] sm:$0xff] %vm490_vm7, %v724_v29  ;;  %v912_v32 = vpop.f32.mrb[3].mxu0 }
 0x6fb PF: > { %s735_s11 = sld [smem:[#allocation7]]  ;;  %s743_s18 = sshll.u32 %s274_s9, 4  ;;  %s1274_s18 = int_to_ptr.vmem [resolvable:$true] %s743_s18 }
 0x6fc   : > { %s1334_s26 = sand.u32 1, %s1061_s29   ;;  %s999_s0 = scalar_lea.vmem %s1274_s18, 128 }
 0x6fd   : > { %s728_s27 = scalar_lea.sflag [#allocation10], %s1334_s26  ;;  %p1000_p4 = scmp.ne.s32.totalorder %s1274_s18, %s999_s0 }
 0x6fe   : > { %s1090_s19 = smov [#allocation9]  }
 0x6ff   : > { %p1001_p5 = pnand %p1000_p4, %p1175_p3  ;;  %s1003_s9 = sshll.u32 %s1090_s19, 4  ;;  %s1004_s9 = int_to_ptr.vmem [resolvable:$false] %s1003_s9 }
 0x700   : > { %p1006_p8 = scmp.lt.s32.totalorder %s1274_s18, %s1004_s9 }
 0x701   : > { %s739_s20 = sadd.s32 %s1069_s8, %s735_s11  ;;  %p1002_p6 = pneg %p1001_p5 }
 0x702   : > { %s853_s12 = sshll.u32 %s739_s20, 7  ;;  %s1005_s8 = scalar_lea.vmem %s1004_s9, 256 }
 0x703   : > { %s741_s25 = scalar_lea.hbm %s1326_s7, %s853_s12  ;;  %p1007_p9 = scmp.lt.s32.totalorder %s1005_s8, %s999_s0 }
 0x705   : > { %p1008_p10 = por %p1007_p9, %p1006_p8 }
 0x707   : > { %p1009_p11 = pnand %p1008_p10, %p1002_p6 }
 0x709   : > { %1012 = shalt.err (!%p1009_p11)
}
 0x70a   : > { %s1013_s1 = scalar_lea.hbm %s741_s25, 128  ;;  %s1017_s22 = scalar_lea.hbm %s1326_s7, 256 }
 0x70b   : > { %p1014_p12 = scmp.ne.s32.totalorder %s741_s25, %s1013_s1  ;;  %p1018_p1 = scmp.lt.u32.totalorder %s741_s25, %s1326_s7 }
 0x70c   : > { %p1019_p2 = scmp.lt.u32.totalorder %s1017_s22, %s1013_s1  ;;  %p1021_p5 = scmp.lt.u32.totalorder %s1013_s1, %s741_s25 }
 0x70d   : > { %p1015_p13 = pnand %p1014_p12, %p1175_p3 }
 0x70e   : > { %p1020_p4 = por %p1019_p2, %p1018_p1 }
 0x70f   : > { %p1016_p0 = pneg %p1015_p13 }
 0x710   : > { %p1022_p8 = por %p1021_p5, %p1020_p4 }
 0x712   : > { %p1023_p6 = pnand %p1022_p8, %p1016_p0 }
 0x714   : > { %1026 = shalt.err (!%p1023_p6)
}
 0x715   : > { %913 = dma.vmem_to_hbm [thread:$0]  (%p1175_p3), %s1274_s18, 128, %s741_s25, %s728_s27  }
 0x716 PF: > { %p919_p9 = scmp.ge.s32.totalorder %s1077_s10, 2  ;;  %s755_s20 = sand.u32 1, %s1057_s28  }
 0x717   : > { %s756_s12 = scalar_lea.sflag [#allocation10], %s755_s20 }
 0x718   : > { %p916_p10 = pnand %p919_p9, %p1184_p7 }
 0x71a   : > { %1052 = dma.done.wait (!%p916_p10), %s756_s12, 128  }
 0x71b   : > { %1054 = vsyncadd (!%p916_p10), %s756_s12, 4294967168  ;;  %s22_s10 = sadd.s32 1, %s1077_s10   ;;  %s1335_s8 = sld [smem:[#allocation12_spill]] }
 0x71c   : > { %p19_p11 = scmp.ge.s32.totalorder %s22_s10, 4   ;;  %s1336_s9 = sld [smem:[#allocation13_spill]] }
 0x71d   : > { %s1337_s28 = smov %s1061_s29  ;;  %s1338_s29 = smov %s1065_s30 }
 0x71e   : > { %s1339_s30 = smov %s1190_s16  ;;  %21 = sbr.rel (!%p19_p11) target bundleno = 7 (0x7), region = 90 }
 0x725   :  { %761 = vsyncpa [#allocation10], 1 }
 0x726   :  { %763 = vsyncpa [#allocation10 + $0x1], 1 }

</bundles_post_ra>
